<compile_context>
chip_gen: v7x
topology: tpu7x:2x2x1
jax: 0.10.0
libtpu: 0.0.40
codegen_flags: <defaults>
</compile_context>

<pallas_src>
import functools

import jax
import jax.numpy as jnp
from jax.experimental import pallas as pl
from jax.experimental.pallas import tpu as pltpu


_MASK_VALUE = -9e15                                   # same constant as PyTorch
_PAD_VALUE = float(jnp.finfo(jnp.float32).min)        # padded (fake) columns
_H_RESIDENT_BYTES = 6 * 1024 * 1024                   # keep h in VMEM below this


def _round_up(v, m):
    return (v + m - 1) // m * m


def _choose_tiles(n, f_pad):
    """Pick (tq, tk, n_pad) with n_pad % 128 == 0, tq | n_pad, tk | n_pad."""
    n_pad = _round_up(max(n, 1), 128)

    def _pick(cands):
        for c in cands:
            if n_pad % c == 0:
                return c
        return n_pad                      # unreachable: 128 always divides

    # Larger TQ cuts h re-read traffic (when streaming) and amortizes per-step
    # overhead; cap it when f_pad is large so acc/out blocks stay VMEM-friendly
    # (v7x has only 64 MiB per TensorCore).
    tq_cands = (1024, 512, 256, 128) if f_pad <= 256 else (512, 256, 128)
    return _pick(tq_cands), _pick((512, 256, 128)), n_pad


# --------------------------------------------------------------------------
# kernel 1: fused projection  x @ [W | W^T a1^T | W^T a2^T]  -> h, f1, f2
# --------------------------------------------------------------------------
def _gat_project_kernel(x_ref, w_ref, h_ref, f1_ref, f2_ref, *, f_pad, f1_col):
    hf = jnp.dot(x_ref[...], w_ref[...], preferred_element_type=jnp.float32)
    h_ref[...] = hf[:, :f_pad].astype(h_ref.dtype)        # bf16 store (one cast)
    f1_ref[...] = hf[:, f1_col:f1_col + 1]                 # f32, full precision
    f2_ref[...] = hf[:, f1_col + 1:f1_col + 2]


# --------------------------------------------------------------------------
# kernel 2: tiled attention with online (flash-style) softmax
# --------------------------------------------------------------------------
def _gat_attention_kernel(f1_ref, f2_ref, neg_ref, adj_ref, h_ref, out_ref,
                          m_sc, l_sc, acc_sc, *,
                          alpha, dropout_p, tk, h_resident):
    k = pl.program_id(1)

    @pl.when(k == 0)
    def _init():
        m_sc[...] = jnp.full_like(m_sc, _PAD_VALUE)
        l_sc[...] = jnp.zeros_like(l_sc)
        acc_sc[...] = jnp.zeros_like(acc_sc)

    # e[q, c] = LeakyReLU(f1[q] + f2[c]) for this (TQ, TK) tile.
    e = f1_ref[...] + f2_ref[...]                      # (TQ,1)+(1,TK) -> (TQ,TK)
    e = jnp.where(e > 0, e, jnp.float32(alpha) * e)    # LeakyReLU(alpha)

    # Adjacency byte: bit0 = edge, bit1 = dropout keep (keep bit only present
    # when dropout is enabled).
    code = adj_ref[...]
    if dropout_p > 0.0:
        code = code.astype(jnp.int32)
        edge = (code & 1) > 0
    else:
        edge = code > 0

    # Mask: -9e15 for real non-edges (matches PyTorch), f32-min for padded
    # columns; neg_ref is a (1, TK) row -> no N^2 constant tensor materialized.
    s = jnp.where(edge, e, neg_ref[...])

    # Online softmax update.
    m_prev = m_sc[...]
    m_new = jnp.maximum(m_prev, jnp.max(s, axis=1, keepdims=True))
    scale = jnp.exp(m_prev - m_new)
    p = jnp.exp(s - m_new)                             # un-normalized probs
    l_sc[...] = scale * l_sc[...] + jnp.sum(p, axis=1, keepdims=True)

    # F.dropout(attention, p): zero the numerator where dropped; the 1/(1-p)
    # survivor scale is hoisted into the finalize (identical result since the
    # denominator uses the undropped probs).
    if dropout_p > 0.0:
        p = jnp.where(code >= 2, p, jnp.float32(0.0))

    if h_resident:
        start = pl.multiple_of(k * tk, tk)
        h_tile = h_ref[pl.ds(start, tk), :]            # h lives fully in VMEM
    else:
        h_tile = h_ref[...]                            # streamed (TK, F_pad)

    acc_sc[...] = scale * acc_sc[...] + jnp.dot(
        p.astype(h_tile.dtype), h_tile, preferred_element_type=jnp.float32)
    m_sc[...] = m_new

    @pl.when(k == pl.num_programs(1) - 1)
    def _finalize():
        inv_keep = 1.0 / (1.0 - dropout_p) if dropout_p > 0.0 else 1.0
        out_ref[...] = (acc_sc[...] * (jnp.float32(inv_keep) / l_sc[...])
                        ).astype(out_ref.dtype)


# --------------------------------------------------------------------------
# wrapper
# --------------------------------------------------------------------------
def graph_attention(x, adj, w, a_weight, *, dropout_p=0.6, alpha=0.2,
                    dropout_key=None, matmul_dtype=jnp.bfloat16):
    """Pallas GraphAttention forward.

    x:        (N, F_in)  node features
    adj:      (N, N)     adjacency, entry > 0 means edge
    w:        (F_out, F_in)  == torch W.weight
    a_weight: (1, 2*F_out)   == torch a.weight
    dropout_key: jax PRNG key for the attention dropout (training-mode
                 F.dropout).  Ignored when dropout_p == 0.
    matmul_dtype: storage/operand dtype for h in the att@h matmul; bfloat16
                  halves h HBM traffic and uses the native MXU path
                  (f32 accumulation kept).
    """
    n, f_in = x.shape
    f_out = w.shape[0]
    f_pad = _round_up(f_out, 128)            # lane-dense feature axis
    tq, tk, n_pad = _choose_tiles(n, f_pad)

    x = x.astype(jnp.float32)
    w_t = w.astype(jnp.float32).T                                # (F_in, F_out)
    a1 = a_weight[:, :f_out].astype(jnp.float32)                 # (1, F_out)
    a2 = a_weight[:, f_out:].astype(jnp.float32)                 # (1, F_out)

    # Fused projection weight: put the a1/a2 projections into spare padded
    # lanes of the f_pad block when possible (halves kernel-1 MXU columns);
    # otherwise fall back to one extra 128-lane block.
    if f_pad - f_out >= 2:
        w_cols, f1_col = f_pad, f_out
    else:
        w_cols, f1_col = f_pad + 128, f_pad
    w_fused = jnp.zeros((f_in, w_cols), jnp.float32)
    w_fused = w_fused.at[:, :f_out].set(w_t)
    w_fused = w_fused.at[:, f1_col].set((w_t @ a1.T)[:, 0])
    w_fused = w_fused.at[:, f1_col + 1].set((w_t @ a2.T)[:, 0])

    x_pad = jnp.zeros((n_pad, f_in), jnp.float32).at[:n, :].set(x)

    # Adjacency byte stream: bit0 = edge; bit1 = dropout keep-mask (packed so a
    # single int8 tile serves both tests -> no separate N^2 keep stream).
    adj_i8 = jnp.zeros((n_pad, n_pad), jnp.int8).at[:n, :n].set(
        (adj > 0).astype(jnp.int8))
    if dropout_p > 0.0:
        if dropout_key is None:
            dropout_key = jax.random.PRNGKey(0)
        keep = (jax.random.uniform(dropout_key, (n_pad, n_pad))
                >= jnp.float32(dropout_p)).astype(jnp.int8)
        adj_i8 = adj_i8 + 2 * keep

    # Per-column masked-logit value: -9e15 for real columns, f32-min for padded
    # columns so padding never leaks into the softmax (even for all-zero rows).
    neg_row = jnp.where(jnp.arange(n_pad) < n, _MASK_VALUE, _PAD_VALUE
                        ).astype(jnp.float32).reshape(1, n_pad)

    # ---- kernel 1: fused projection --------------------------------------
    h_pad, f1, f2 = pl.pallas_call(
        functools.partial(_gat_project_kernel, f_pad=f_pad, f1_col=f1_col),
        out_shape=(jax.ShapeDtypeStruct((n_pad, f_pad), matmul_dtype),
                   jax.ShapeDtypeStruct((n_pad, 1), jnp.float32),
                   jax.ShapeDtypeStruct((n_pad, 1), jnp.float32)),
        grid=(n_pad // tq,),
        in_specs=[pl.BlockSpec((tq, f_in), lambda i: (i, 0)),
                  pl.BlockSpec((f_in, w_cols), lambda i: (0, 0))],
        out_specs=(pl.BlockSpec((tq, f_pad), lambda i: (i, 0)),
                   pl.BlockSpec((tq, 1), lambda i: (i, 0)),
                   pl.BlockSpec((tq, 1), lambda i: (i, 0))),
        compiler_params=pltpu.CompilerParams(
            dimension_semantics=("parallel",)),
    )(x_pad, w_fused)
    f2_row = f2.reshape(1, n_pad)

    # ---- kernel 2: tiled attention ----------------------------------------
    h_bytes = n_pad * f_pad * jnp.dtype(matmul_dtype).itemsize
    h_resident = h_bytes <= _H_RESIDENT_BYTES
    if h_resident:
        # Constant block index -> h is DMA'd once and stays resident in VMEM.
        h_spec = pl.BlockSpec((n_pad, f_pad), lambda i, k: (0, 0))
    else:
        h_spec = pl.BlockSpec((tk, f_pad), lambda i, k: (k, 0))

    in_specs = [
        pl.BlockSpec((tq, 1), lambda i, k: (i, 0)),        # f1 (query rows)
        pl.BlockSpec((1, tk), lambda i, k: (0, k)),        # f2 (key cols)
        pl.BlockSpec((1, tk), lambda i, k: (0, k)),        # per-col mask value
        pl.BlockSpec((tq, tk), lambda i, k: (i, k)),       # adjacency+keep int8
        h_spec,                                            # h (bf16)
    ]

    h_hbm_bytes = (h_bytes if h_resident
                   else (n_pad // tq) * n_pad * f_pad
                   * jnp.dtype(matmul_dtype).itemsize)
    bytes_accessed = (n_pad * n_pad                          # adjacency (int8)
                      + h_hbm_bytes                          # h reads
                      + n_pad * f_pad * 4                    # output
                      + 3 * n_pad * 4)                       # f1/f2/neg
    cost = pl.CostEstimate(
        flops=int(2 * n_pad * n_pad * f_pad + 10 * n_pad * n_pad),
        transcendentals=int(n_pad * n_pad),
        bytes_accessed=int(bytes_accessed))

    out = pl.pallas_call(
        functools.partial(_gat_attention_kernel, alpha=alpha,
                          dropout_p=dropout_p, tk=tk, h_resident=h_resident),
        out_shape=jax.ShapeDtypeStruct((n_pad, f_pad), jnp.float32),
        grid=(n_pad // tq, n_pad // tk),
        in_specs=in_specs,
        out_specs=pl.BlockSpec((tq, f_pad), lambda i, k: (i, 0)),
        scratch_shapes=[pltpu.VMEM((tq, 1), jnp.float32),       # running max
                        pltpu.VMEM((tq, 1), jnp.float32),       # running denom
                        pltpu.VMEM((tq, f_pad), jnp.float32)],  # output acc
        compiler_params=pltpu.CompilerParams(
            dimension_semantics=("parallel", "arbitrary"),
            vmem_limit_bytes=32 * 1024 * 1024),
        cost_estimate=cost,
    )(f1, f2_row, neg_row, adj_i8, h_pad)

    return out[:n, :f_out]


def ref_graph_attention(x, adj, w, a_weight, alpha=0.2):
    """Pure-JAX reference (dropout disabled), mirrors the PyTorch math."""
    f_out = w.shape[0]
    h = x @ w.T
    f1 = h @ a_weight[:, :f_out].T
    f2 = h @ a_weight[:, f_out:].T
    e = f1 + f2.T
    e = jnp.where(e > 0, e, alpha * e)           # LeakyReLU
    att = jnp.where(adj > 0, e, _MASK_VALUE)
    att = jax.nn.softmax(att, axis=1)
    return att @ h


if __name__ == "__main__":
    # Small shapes implied by the module: N nodes, in/out feature dims.
    N, F_IN, F_OUT = 8, 16, 32
    ALPHA, DROPOUT = 0.2, 0.6

    key = jax.random.PRNGKey(0)
    kx, kadj, kw, ka, kdrop = jax.random.split(key, 5)

    x = jax.random.normal(kx, (N, F_IN), dtype=jnp.float32)
    adj = (jax.random.uniform(kadj, (N, N)) > 0.5).astype(jnp.float32)
    adj = jnp.maximum(adj, jnp.eye(N, dtype=jnp.float32))        # self-loops

    # nn.Linear weight shapes: W.weight (F_OUT, F_IN), a.weight (1, 2*F_OUT)
    w = jax.random.normal(kw, (F_OUT, F_IN), dtype=jnp.float32) / jnp.sqrt(F_IN)
    a_w = jax.random.normal(ka, (1, 2 * F_OUT),
                            dtype=jnp.float32) / jnp.sqrt(2.0 * F_OUT)

    # 1) deterministic path (dropout off) vs. pure-JAX reference.
    out_nodrop = jax.block_until_ready(
        graph_attention(x, adj, w, a_w, dropout_p=0.0, alpha=ALPHA))
    ref = ref_graph_attention(x, adj, w, a_w, alpha=ALPHA)
    assert out_nodrop.shape == (N, F_OUT)
    # Tolerance covers bf16 operand rounding (f32 accumulation) vs. the
    # f32 XLA reference.
    assert jnp.allclose(out_nodrop, ref, rtol=2e-2, atol=2e-2), \
        "mismatch vs reference"

    # 2) full module forward with the default training-mode dropout p=0.6.
    out = jax.block_until_ready(
        graph_attention(x, adj, w, a_w, dropout_p=DROPOUT, alpha=ALPHA,
                        dropout_key=kdrop))
    assert out.shape == (N, F_OUT)
    assert bool(jnp.all(jnp.isfinite(out)))

    print("KERNEL_OK")
</pallas_src>

<mosaic_0001>
module attributes {stable_mosaic.version = 11 : i64} {
  func.func @_gat_project_kernel(%arg0: i32, %arg1: memref<128x16xf32, #tpu.memory_space<vmem>>, %arg2: memref<16x128xf32, #tpu.memory_space<vmem>>, %arg3: memref<128x128xbf16, #tpu.memory_space<vmem>>, %arg4: memref<128x1xf32, #tpu.memory_space<vmem>>, %arg5: memref<128x1xf32, #tpu.memory_space<vmem>>) attributes {dimension_semantics = [#tpu.dimension_semantics<parallel>], iteration_bounds = array<i64: 1>, scalar_prefetch = 0 : i64, scratch_operands = 0 : i64, tpu.core_type = #tpu.core_type<tc>, window_params = [{transform_indices = @transform_0, window_bounds = array<i64: 128, 16>}, {pipeline_mode = #tpu.pipeline_mode<synchronous>, transform_indices = @transform_1, window_bounds = array<i64: 16, 128>}, {transform_indices = @transform_2, window_bounds = array<i64: 128, 128>}, {transform_indices = @transform_3, window_bounds = array<i64: 128, 1>}, {transform_indices = @transform_4, window_bounds = array<i64: 128, 1>}]} {
    %c0 = arith.constant 0 : index
    %c0_0 = arith.constant 0 : index
    %0 = vector.load %arg1[%c0, %c0_0] : memref<128x16xf32, #tpu.memory_space<vmem>>, vector<128x16xf32>
    %c0_1 = arith.constant 0 : index
    %c0_2 = arith.constant 0 : index
    %1 = vector.load %arg2[%c0_1, %c0_2] : memref<16x128xf32, #tpu.memory_space<vmem>>, vector<16x128xf32>
    %cst = arith.constant dense<0.000000e+00> : vector<128x128xf32>
    %2 = tpu.matmul %0, %1, %cst {dimension_numbers = #tpu.dot_dimension_numbers<[1], [0], [0], [1], [0, 0, 1, 1], [], []>} : vector<128x16xf32>, vector<16x128xf32>, vector<128x128xf32> -> vector<128x128xf32>
    %3 = arith.truncf %2 : vector<128x128xf32> to vector<128x128xbf16>
    %c0_3 = arith.constant 0 : index
    %c0_4 = arith.constant 0 : index
    %4 = vector.load %arg3[%c0_3, %c0_4] : memref<128x128xbf16, #tpu.memory_space<vmem>>, vector<128x128xbf16>
    tpu.vector_store %arg3[%c0_3, %c0_4], %3 {strides = array<i32>} : memref<128x128xbf16, #tpu.memory_space<vmem>>, vector<128x128xbf16>,
    %5 = vector.extract_strided_slice %2 {offsets = [0, 32], sizes = [128, 1], strides = [1, 1]} : vector<128x128xf32> to vector<128x1xf32>
    %c0_5 = arith.constant 0 : index
    %c0_6 = arith.constant 0 : index
    %6 = vector.load %arg4[%c0_5, %c0_6] : memref<128x1xf32, #tpu.memory_space<vmem>>, vector<128x1xf32>
    tpu.vector_store %arg4[%c0_5, %c0_6], %5 {strides = array<i32>} : memref<128x1xf32, #tpu.memory_space<vmem>>, vector<128x1xf32>,
    %7 = vector.extract_strided_slice %2 {offsets = [0, 33], sizes = [128, 1], strides = [1, 1]} : vector<128x128xf32> to vector<128x1xf32>
    %c0_7 = arith.constant 0 : index
    %c0_8 = arith.constant 0 : index
    %8 = vector.load %arg5[%c0_7, %c0_8] : memref<128x1xf32, #tpu.memory_space<vmem>>, vector<128x1xf32>
    tpu.vector_store %arg5[%c0_7, %c0_8], %7 {strides = array<i32>} : memref<128x1xf32, #tpu.memory_space<vmem>>, vector<128x1xf32>,
    return
  }
  func.func @transform_0(%arg0: i32) -> (i32, i32) {
    %c0_i32 = arith.constant 0 : i32
    %c0_i32_0 = arith.constant 0 : i32
    return %arg0, %c0_i32 : i32, i32
  }
  func.func @transform_1(%arg0: i32) -> (i32, i32) {
    %c0_i32 = arith.constant 0 : i32
    %c0_i32_0 = arith.constant 0 : i32
    %c0_i32_1 = arith.constant 0 : i32
    return %c0_i32, %c0_i32_0 : i32, i32
  }
  func.func @transform_2(%arg0: i32) -> (i32, i32) {
    %c0_i32 = arith.constant 0 : i32
    %c0_i32_0 = arith.constant 0 : i32
    return %arg0, %c0_i32 : i32, i32
  }
  func.func @transform_3(%arg0: i32) -> (i32, i32) {
    %c0_i32 = arith.constant 0 : i32
    %c0_i32_0 = arith.constant 0 : i32
    return %arg0, %c0_i32 : i32, i32
  }
  func.func @transform_4(%arg0: i32) -> (i32, i32) {
    %c0_i32 = arith.constant 0 : i32
    %c0_i32_0 = arith.constant 0 : i32
    return %arg0, %c0_i32 : i32, i32
  }
}

</mosaic_0001>

<bundles_post_ra>
// kernel: tpu_custom_call.1
= control target key start
LH: loop header
LB: loop body
LE: loop exit
PB: predicated region body
PF: predicated region fallthrough
CT: control target
= control target key end

     0   :  { %vm33_vm0 = vcmask 130048   ;;  %s924_s0 = inlined_call_operand.vmem [shape: f32[128,16], index: 0, kind: input, shape index: {}]   ;;  %s925_s1 = inlined_call_operand.vmem [shape: f32[16,128], index: 1, kind: input, shape index: {}]   ;;  %s926_s2 = inlined_call_operand.hbm [shape: bf16[128,128], index: 2, kind: output, shape index: {0}]   ;;  %s927_s3 = inlined_call_operand.vmem [shape: f32[128,1], index: 3, kind: output, shape index: {1}]   ;;  %s928_s4 = inlined_call_operand.vmem [shape: f32[128,1], index: 4, kind: output, shape index: {2}]  }
   0x1   :  { %v31_v0 = vld [vmem:[%s925_s1] sm:$0xff]  ;;  %v32_v1 = vld [vmem:[%s925_s1 + $0x8] sm:$0xff]  ;;  %v17_v7 = vld [vmem:[%s924_s0 + $0x10] sm:$0xff] }
   0x2   :  { %v15_v2 = vld [vmem:[%s924_s0] sm:$0xff]  ;;  %v617_v3 = vpack.c.bf16 %v32_v1, %v31_v0  ;;  %v16_v5 = vld [vmem:[%s924_s0 + $0x8] sm:$0xff]  ;;  %v25_v8 = vld [vmem:[%s924_s0 + $0x50] sm:$0xff] }
   0x3   :  { %593 = vmatprep.mubr.msk.f32.mxu0 %vm33_vm0, %v15_v2  ;;  %v23_v4 = vld [vmem:[%s924_s0 + $0x40] sm:$0xff]  ;;  %v24_v6 = vld [vmem:[%s924_s0 + $0x48] sm:$0xff] }
   0x4   :  { %605 = vmatprep.mubr.msk.f32.mxu1 %vm33_vm0, %v23_v4  ;;  %618 = vmatprep.subr.bf16.mxu0 %v617_v3 }
   0x5   :  { %621 = vmatprep.subr.bf16.mxu1 %v617_v3  ;;  %620 = vmatpush3.bf16.msra.mxu0 %v617_v3 }
   0x6   :  { %622 = vmatpush3.bf16.msra.mxu1 %v617_v3 }
   0x7   :  { %10 = vsyncpa [#allocation3], 0  ;;  %v18_v9 = vld [vmem:[%s924_s0 + $0x18] sm:$0xff]  ;;  %v19_v11 = vld [vmem:[%s924_s0 + $0x20] sm:$0xff]  ;;  %s652_s1 = smov 96   ;;  %s654_s24 = smov [#allocation2]  }
   0x8   :  { %594 = vmatmul.mubr.msk.f32.vlgmr.msra.gmra.mrb[0].mxu0 %vm33_vm0, %v16_v5  ;;  %v26_v10 = vld [vmem:[%s924_s0 + $0x58] sm:$0xff]  ;;  %v27_v12 = vld [vmem:[%s924_s0 + $0x60] sm:$0xff]  ;;  %v20_v13 = vld [vmem:[%s924_s0 + $0x28] sm:$0xff]  ;;  %s457_s25 = sshll.u32 %s654_s24, 4  ;;  %s458_s25 = int_to_ptr.vmem [resolvable:$true] %s457_s25 }
   0x9   :  { %606 = vmatmul.mubr.msk.f32.vlgmr.msra.gmra.mrb[0].mxu1 %vm33_vm0, %v24_v6  ;;  %596 = vmatprep.mubr.msk.f32.mxu0 %vm33_vm0, %v17_v7  ;;  %v28_v14 = vld [vmem:[%s924_s0 + $0x68] sm:$0xff]  ;;  %v21_v15 = vld [vmem:[%s924_s0 + $0x30] sm:$0xff]  ;;  %v22_v17 = vld [vmem:[%s924_s0 + $0x38] sm:$0xff]  ;;  %s628_s26 = scalar_lea.vmem %s458_s25, 1024  ;;  %p633_p1 = scmp.lt.s32.totalorder %s458_s25, %s458_s25 }
   0xa   :  { %608 = vmatprep.mubr.msk.f32.mxu1 %vm33_vm0, %v25_v8  ;;  %v29_v16 = vld [vmem:[%s924_s0 + $0x70] sm:$0xff]  ;;  %v30_v18 = vld [vmem:[%s924_s0 + $0x78] sm:$0xff]  ;;  %s653_s0 = smov 95   ;;  %p629_p0 = scmp.ne.s32.totalorder %s458_s25, %s628_s26 }
   0xb   :  { %p634_p2 = scmp.lt.s32.totalorder %s628_s26, %s628_s26 }
   0xc   :  { %597 = vmatmul.mubr.msk.f32.gmra.mrb[2].mxu0 %vm33_vm0, %v18_v9 }
   0xd   :  { %609 = vmatmul.mubr.msk.f32.gmra.mrb[2].mxu1 %vm33_vm0, %v26_v10  ;;  %599 = vmatprep.mubr.msk.f32.mxu0 %vm33_vm0, %v19_v11  ;;  %p635_p3 = por %p634_p2, %p633_p1 }
   0xe   :  { %611 = vmatprep.mubr.msk.f32.mxu1 %vm33_vm0, %v27_v12 }
   0xf   :  { %p636_p4 = pnand %p635_p3, %p629_p0 }
  0x10   :  { %600 = vmatmul.mubr.msk.f32.gmra.mrb[4].mxu0 %vm33_vm0, %v20_v13 }
  0x11   :  { %612 = vmatmul.mubr.msk.f32.gmra.mrb[4].mxu1 %vm33_vm0, %v28_v14  ;;  %602 = vmatprep.mubr.msk.f32.mxu0 %vm33_vm0, %v21_v15 }
  0x12   :  { %614 = vmatprep.mubr.msk.f32.mxu1 %vm33_vm0, %v29_v16 }
  0x14   :  { %603 = vmatmul.mubr.msk.f32.gmra.mrb[6].mxu0 %vm33_vm0, %v22_v17 }
  0x15   :  { %615 = vmatmul.mubr.msk.f32.gmra.mrb[6].mxu1 %vm33_vm0, %v30_v18 }
  0xdb   :  { %v595_v19 = vpop.f32.mrb[0].mxu0 }
  0xdc   :  { %v607_v20 = vpop.f32.mrb[0].mxu1  ;;  %325 = vrot.lane.b32.xlu0 %v595_v19, %s652_s1  ;;  %v148_v22 = vpop.f32.mrb[1].mxu0 }
  0xdd   :  { %341 = vrot.lane.b32.xlu1 %v607_v20, %s652_s1  ;;  %v188_v21 = vpop.f32.mrb[1].mxu1  ;;  %v527_v24 = vpack.c.bf16 %v595_v19, %v148_v22 }
  0xde   :  { %v547_v23 = vpack.c.bf16 %v607_v20, %v188_v21 }
  0xdf   :  { %528 = vst [vmem:[#allocation2] sm:$0xff] %v527_v24   ;;  %v598_v25 = vpop.f32.mrb[2].mxu0 }
  0xe0   :  { %567 = vst [vmem:[#allocation2 + $0x20] sm:$0xff] %v547_v23   ;;  %v610_v26 = vpop.f32.mrb[2].mxu1  ;;  %323 = vrot.lane.b32.xlu0 %v148_v22, %s652_s1  ;;  %v158_v27 = vpop.f32.mrb[3].mxu0 }
  0xe1   :  { %390 = vrot.lane.b32.xlu1 %v595_v19, %s653_s0  ;;  %v198_v28 = vpop.f32.mrb[3].mxu1  ;;  %v532_v29 = vpack.c.bf16 %v598_v25, %v158_v27 }
  0xe2   :  { %v552_v30 = vpack.c.bf16 %v610_v26, %v198_v28 }
  0xe3   :  { %564 = vst [vmem:[#allocation2 + $0x8] sm:$0xff] %v532_v29   ;;  %v601_v31 = vpop.f32.mrb[4].mxu0 }
  0xe4   :  { %568 = vst [vmem:[#allocation2 + $0x28] sm:$0xff] %v552_v30   ;;  %v613_v32 = vpop.f32.mrb[4].mxu1  ;;  %339 = vrot.lane.b32.xlu0 %v188_v21, %s652_s1  ;;  %v168_v33 = vpop.f32.mrb[5].mxu0 }
  0xe5   :  { %406 = vrot.lane.b32.xlu1 %v607_v20, %s653_s0  ;;  %v208_v34 = vpop.f32.mrb[5].mxu1  ;;  %v537_v35 = vpack.c.bf16 %v601_v31, %v168_v33 }
  0xe6   :  { %v557_v36 = vpack.c.bf16 %v613_v32, %v208_v34 }
  0xe7   :  { %565 = vst [vmem:[#allocation2 + $0x10] sm:$0xff] %v537_v35   ;;  %v604_v37 = vpop.f32.mrb[6].mxu0 }
  0xe8   :  { %569 = vst [vmem:[#allocation2 + $0x30] sm:$0xff] %v557_v36   ;;  %v616_v38 = vpop.f32.mrb[6].mxu1  ;;  %388 = vrot.lane.b32.xlu0 %v148_v22, %s653_s0  ;;  %v178_v39 = vpop.f32.mrb[7].mxu0 }
  0xe9   :  { %329 = vrot.lane.b32.xlu1 %v598_v25, %s652_s1  ;;  %v218_v40 = vpop.f32.mrb[7].mxu1  ;;  %v542_v41 = vpack.c.bf16 %v604_v37, %v178_v39 }
  0xea   :  { %v562_v42 = vpack.c.bf16 %v616_v38, %v218_v40 }
  0xeb   :  { %566 = vst [vmem:[#allocation2 + $0x18] sm:$0xff] %v542_v41  }
  0xec   :  { %570 = vst [vmem:[#allocation2 + $0x38] sm:$0xff] %v562_v42   ;;  %404 = vrot.lane.b32.xlu0 %v188_v21, %s653_s0 }
  0xed   :  { %345 = vrot.lane.b32.xlu1 %v610_v26, %s652_s1 }
  0xf0   :  { %343 = vrot.lane.b32.xlu0 %v198_v28, %s652_s1 }
  0xf1   :  { %394 = vrot.lane.b32.xlu1 %v598_v25, %s653_s0 }
  0xf4   :  { %392 = vrot.lane.b32.xlu0 %v158_v27, %s653_s0 }
  0xf5   :  { %410 = vrot.lane.b32.xlu1 %v610_v26, %s653_s0 }
  0xf8   :  { %408 = vrot.lane.b32.xlu0 %v198_v28, %s653_s0 }
  0xf9   :  { %327 = vrot.lane.b32.xlu1 %v158_v27, %s652_s1 }
  0xfc   :  { %331 = vrot.lane.b32.xlu0 %v168_v33, %s652_s1 }
  0xfd   :  { %333 = vrot.lane.b32.xlu1 %v601_v31, %s652_s1 }
 0x100   :  { %347 = vrot.lane.b32.xlu0 %v208_v34, %s652_s1 }
 0x101   :  { %349 = vrot.lane.b32.xlu1 %v613_v32, %s652_s1 }
 0x104   :  { %396 = vrot.lane.b32.xlu0 %v168_v33, %s653_s0 }
 0x105   :  { %398 = vrot.lane.b32.xlu1 %v601_v31, %s653_s0 }
 0x108   :  { %412 = vrot.lane.b32.xlu0 %v208_v34, %s653_s0 }
 0x109   :  { %414 = vrot.lane.b32.xlu1 %v613_v32, %s653_s0 }
 0x10c   :  { %335 = vrot.lane.b32.xlu0 %v178_v39, %s652_s1 }
 0x10d   :  { %337 = vrot.lane.b32.xlu1 %v604_v37, %s652_s1 }
 0x10e   :  { %639 = shalt.err (!%p636_p4)
}
 0x10f   :  { %s640_s29 = scalar_lea.hbm %s926_s2, 1024 }
 0x110   :  { %p641_p5 = scmp.ne.s32.totalorder %s926_s2, %s640_s29  ;;  %p644_p6 = scmp.lt.u32.totalorder %s640_s29, %s926_s2 }
 0x112   :  { %p646_p7 = pnand %p644_p6, %p641_p5 }
 0x114   :  { %649 = shalt.err (!%p646_p7)
}
 0x115   :  { %s655_s8 = smov 64   ;;  %s656_s9 = smov 4   ;;  %353 = vrot.lane.b32.xlu1 %v616_v38, %s652_s1  ;;  %351 = vrot.lane.b32.xlu0 %v218_v40, %s652_s1  ;;  %vm371_vm1 = vcmask 7168  }
 0x116   :  { %463 = dma.vmem_to_hbm [thread:$0]  %s458_s25, 1024, %s926_s2, [#allocation3], %s655_s8, %s655_s8, %s656_s9  }
 0x119   :  { %402 = vrot.lane.b32.xlu1 %v604_v37, %s653_s0  ;;  %400 = vrot.lane.b32.xlu0 %v178_v39, %s653_s0 }
 0x11d   :  { %418 = vrot.lane.b32.xlu1 %v616_v38, %s653_s0  ;;  %416 = vrot.lane.b32.xlu0 %v218_v40, %s653_s0 }
 0x14e   :  { %v326_v44 = vpop.permute.xlu0 %325 }
 0x14f   :  { %v342_v43 = vpop.permute.xlu1 %341  ;;  %373 = vst.msk [vmem:[%s927_s3 + $0x8] sm:$0xff] %vm371_vm1, %v326_v44 }
 0x150   :  { %381 = vst.msk [vmem:[%s927_s3 + $0x48] sm:$0xff] %vm371_vm1, %v342_v43 }
 0x152   :  { %v324_v46 = vpop.permute.xlu0 %323 }
 0x153   :  { %v391_v45 = vpop.permute.xlu1 %390  ;;  %372 = vst.msk [vmem:[%s927_s3] sm:$0xff] %vm371_vm1, %v324_v46 }
 0x154   :  { %437 = vst.msk [vmem:[%s928_s4 + $0x8] sm:$0xff] %vm371_vm1, %v391_v45 }
 0x156   :  { %v340_v48 = vpop.permute.xlu0 %339 }
 0x157   :  { %v407_v47 = vpop.permute.xlu1 %406  ;;  %380 = vst.msk [vmem:[%s927_s3 + $0x40] sm:$0xff] %vm371_vm1, %v340_v48 }
 0x158   :  { %445 = vst.msk [vmem:[%s928_s4 + $0x48] sm:$0xff] %vm371_vm1, %v407_v47 }
 0x15a   :  { %v389_v49 = vpop.permute.xlu0 %388 }
 0x15b   :  { %v330_v50 = vpop.permute.xlu1 %329  ;;  %436 = vst.msk [vmem:[%s928_s4] sm:$0xff] %vm371_vm1, %v389_v49 }
 0x15c   :  { %375 = vst.msk [vmem:[%s927_s3 + $0x18] sm:$0xff] %vm371_vm1, %v330_v50 }
 0x15e   :  { %v405_v51 = vpop.permute.xlu0 %404 }
 0x15f   :  { %v346_v52 = vpop.permute.xlu1 %345  ;;  %444 = vst.msk [vmem:[%s928_s4 + $0x40] sm:$0xff] %vm371_vm1, %v405_v51 }
 0x160   :  { %383 = vst.msk [vmem:[%s927_s3 + $0x58] sm:$0xff] %vm371_vm1, %v346_v52 }
 0x162   :  { %v344_v53 = vpop.permute.xlu0 %343 }
 0x163   :  { %v395_v54 = vpop.permute.xlu1 %394  ;;  %382 = vst.msk [vmem:[%s927_s3 + $0x50] sm:$0xff] %vm371_vm1, %v344_v53 }
 0x164   :  { %439 = vst.msk [vmem:[%s928_s4 + $0x18] sm:$0xff] %vm371_vm1, %v395_v54 }
 0x166   :  { %v393_v56 = vpop.permute.xlu0 %392 }
 0x167   :  { %v411_v55 = vpop.permute.xlu1 %410  ;;  %438 = vst.msk [vmem:[%s928_s4 + $0x10] sm:$0xff] %vm371_vm1, %v393_v56 }
 0x168   :  { %447 = vst.msk [vmem:[%s928_s4 + $0x58] sm:$0xff] %vm371_vm1, %v411_v55 }
 0x16a   :  { %v409_v57 = vpop.permute.xlu0 %408 }
 0x16b   :  { %v328_v58 = vpop.permute.xlu1 %327  ;;  %446 = vst.msk [vmem:[%s928_s4 + $0x50] sm:$0xff] %vm371_vm1, %v409_v57 }
 0x16c   :  { %374 = vst.msk [vmem:[%s927_s3 + $0x10] sm:$0xff] %vm371_vm1, %v328_v58 }
 0x16e   :  { %v332_v60 = vpop.permute.xlu0 %331 }
 0x16f   :  { %v334_v59 = vpop.permute.xlu1 %333  ;;  %376 = vst.msk [vmem:[%s927_s3 + $0x20] sm:$0xff] %vm371_vm1, %v332_v60 }
 0x170   :  { %377 = vst.msk [vmem:[%s927_s3 + $0x28] sm:$0xff] %vm371_vm1, %v334_v59 }
 0x172   :  { %v348_v62 = vpop.permute.xlu0 %347 }
 0x173   :  { %v350_v61 = vpop.permute.xlu1 %349  ;;  %384 = vst.msk [vmem:[%s927_s3 + $0x60] sm:$0xff] %vm371_vm1, %v348_v62 }
 0x174   :  { %385 = vst.msk [vmem:[%s927_s3 + $0x68] sm:$0xff] %vm371_vm1, %v350_v61 }
 0x176   :  { %v397_v0 = vpop.permute.xlu0 %396 }
 0x177   :  { %v399_v63 = vpop.permute.xlu1 %398  ;;  %440 = vst.msk [vmem:[%s928_s4 + $0x20] sm:$0xff] %vm371_vm1, %v397_v0 }
 0x178   :  { %441 = vst.msk [vmem:[%s928_s4 + $0x28] sm:$0xff] %vm371_vm1, %v399_v63 }
 0x17a   :  { %v413_v2 = vpop.permute.xlu0 %412 }
 0x17b   :  { %v415_v1 = vpop.permute.xlu1 %414  ;;  %448 = vst.msk [vmem:[%s928_s4 + $0x60] sm:$0xff] %vm371_vm1, %v413_v2 }
 0x17c   :  { %449 = vst.msk [vmem:[%s928_s4 + $0x68] sm:$0xff] %vm371_vm1, %v415_v1 }
 0x17e   :  { %v336_v4 = vpop.permute.xlu0 %335 }
 0x17f   :  { %v338_v3 = vpop.permute.xlu1 %337  ;;  %378 = vst.msk [vmem:[%s927_s3 + $0x30] sm:$0xff] %vm371_vm1, %v336_v4 }
 0x180   :  { %379 = vst.msk [vmem:[%s927_s3 + $0x38] sm:$0xff] %vm371_vm1, %v338_v3 }
 0x187   :  { %v354_v5 = vpop.permute.xlu1 %353  ;;  %v352_v6 = vpop.permute.xlu0 %351 }
 0x188   :  { %387 = vst.msk [vmem:[%s927_s3 + $0x78] sm:$0xff] %vm371_vm1, %v354_v5  ;;  %386 = vst.msk [vmem:[%s927_s3 + $0x70] sm:$0xff] %vm371_vm1, %v352_v6 }
 0x18b   :  { %v403_v7 = vpop.permute.xlu1 %402  ;;  %v401_v8 = vpop.permute.xlu0 %400 }
 0x18c   :  { %443 = vst.msk [vmem:[%s928_s4 + $0x38] sm:$0xff] %vm371_vm1, %v403_v7  ;;  %442 = vst.msk [vmem:[%s928_s4 + $0x30] sm:$0xff] %vm371_vm1, %v401_v8 }
 0x18f   :  { %v419_v9 = vpop.permute.xlu1 %418  ;;  %v417_v10 = vpop.permute.xlu0 %416 }
 0x190   :  { %451 = vst.msk [vmem:[%s928_s4 + $0x78] sm:$0xff] %vm371_vm1, %v419_v9  ;;  %450 = vst.msk [vmem:[%s928_s4 + $0x70] sm:$0xff] %vm371_vm1, %v417_v10 }
 0x191   :  { %650 = dma.done.wait [#allocation3], 1024  }
 0x192   :  { %651 = vsyncadd [#allocation3], 4294966272 }
 0x193   :  { %475 = vsyncpa [#allocation3], 1 }

</bundles_post_ra>
